<compile_context>
chip_gen: v7x
topology: tpu7x:2x2x1
jax: 0.10.0
libtpu: 0.0.40
codegen_flags: <defaults>
</compile_context>

<pallas_src>
import functools

import jax
import jax.numpy as jnp
import numpy as np
from jax.experimental import pallas as pl
from jax.experimental.pallas import tpu as pltpu

EPS = 1e-5  # PyTorch BatchNorm default eps


def _bottleneck_kernel(x_ref, w1_ref, w2_ref, w3_ref, b_ref, yx_ref,
                       o_ref, cols_ref, *, height, width):
    """Whole bottleneck block for one group of images (one grid step).

    Layout: channels on sublanes, flattened batch*spatial (Mb lanes).
      x_ref    [Cin,  Mb]  input slab (also the identity residual)
      w1_ref   [P,    Cin] conv1 weights, bn1 scale folded in
      w2_ref   [P,    9*P] conv2 im2col weights, bn2 scale folded in
      w3_ref   [Cout, P]   conv3 weights, bn3 scale folded in
      b_ref    [Cout, 3]   biases (col 0: bn1, col 1: bn2, col 2: bn3)
      yx_ref   [2,    Mb]  per-lane (row, col) coordinate inside its image
      o_ref    [Cout, Mb]  output slab (lane-dense store)
      cols_ref [9*P,  Mb]  VMEM scratch holding the im2col matrix
    """
    P = w1_ref.shape[0]
    Mb = x_ref.shape[1]

    x = x_ref[...]
    b = b_ref[...]

    # ---- conv1 (1x1) + bn1 + relu ------------------------------------ [P, Mb]
    t1 = jnp.dot(w1_ref[...], x, preferred_element_type=jnp.float32)
    t1 = jnp.maximum(t1 + b[:P, 0:1], 0.0)

    # ---- conv2 (3x3, stride=1, pad=1) as one im2col matmul --------------------
    # Shifted windows via static XLU lane rolls; edge masks (zero padding and
    # cross-image wraparound kill) rebuilt from the per-lane coordinates.
    yy = yx_ref[0:1, :]   # [1, Mb] row index of each lane inside its image
    xx = yx_ref[1:2, :]   # [1, Mb] col index of each lane inside its image
    for k in range(9):
        oy, ox = k // 3 - 1, k % 3 - 1
        off = oy * width + ox
        win = t1 if off == 0 else pltpu.roll(t1, shift=(-off) % Mb, axis=1)
        conds = []
        if oy < 0:
            conds.append(yy >= float(-oy))
        elif oy > 0:
            conds.append(yy < float(height - oy))
        if ox < 0:
            conds.append(xx >= float(-ox))
        elif ox > 0:
            conds.append(xx < float(width - ox))
        if conds:
            valid = functools.reduce(lambda a, c: a & c, conds)   # [1, Mb]
            win = jnp.where(valid, win, 0.0)                      # broadcast over P
        cols_ref[k * P:(k + 1) * P, :] = win
    t2 = jnp.dot(w2_ref[...], cols_ref[...], preferred_element_type=jnp.float32)
    t2 = jnp.maximum(t2 + b[:P, 1:2], 0.0)   # [P, Mb]

    # ---- conv3 (1x1) + bn3 -----------------------------------------------------
    t3 = jnp.dot(w3_ref[...], t2, preferred_element_type=jnp.float32)
    t3 = t3 + b[:, 2:3]                      # [Cout, Mb]

    # ---- identity residual (downsample=None => Cin == Cout) + relu -------------
    o_ref[...] = jnp.maximum(t3 + x, 0.0)


def _fold_bn(gamma, beta, mean, var):
    scale = gamma / jnp.sqrt(var + EPS)
    bias = beta - mean * scale
    return scale.astype(jnp.float32), bias.astype(jnp.float32)


def _lane_coords(images_per_block, h, w):
    """[2, images_per_block*h*w] f32: (row, col) of every lane inside its image."""
    j = np.arange(images_per_block * h * w)
    y = (j // w) % h
    x = j % w
    return np.stack([y, x], axis=0).astype(np.float32)


def resnet_bottleneck_pallas(x_nchw, params, *, target_block_lanes=2048):
    """ResNetBottleneck forward (inference-mode BN). NCHW in / NCHW out."""
    N, Cin, H, W = x_nchw.shape
    P = params["w1"].shape[0]
    Cout = params["w3"].shape[0]
    assert Cin == Cout, "downsample=None requires in_planes == planes * expansion"
    hw = H * W
    M = N * hw

    # Grid blocking: groups of whole images.  Big enough to amortize per-step
    # overhead, lane-dense (multiple of 128 lanes) so stores are unmasked, and
    # independent -> "parallel" (shardable across TensorCores on v7x).
    ipb = max(1, min(N, target_block_lanes // max(hw, 1)))
    while N % ipb:
        ipb -= 1
    if (ipb * hw) % 128 != 0:
        ipb = N                       # fall back to one full-slab grid step
    Mb = ipb * hw
    G = N // ipb

    # NCHW -> channels-first slab [C, N*H*W] (flattened batch*spatial on lanes).
    x_slab = jnp.transpose(x_nchw, (1, 0, 2, 3)).reshape(Cin, M).astype(jnp.float32)

    s1, b1 = _fold_bn(*params["bn1"])
    s2, b2 = _fold_bn(*params["bn2"])
    s3, b3 = _fold_bn(*params["bn3"])

    # Fold BN scales into the conv weights ((w*s) @ x + b == s*(w @ x) + b).
    w1t = params["w1"].reshape(P, Cin).astype(jnp.float32) * s1[:, None]        # [P, Cin]
    w2t = (jnp.transpose(params["w2"], (0, 2, 3, 1)).reshape(P, 9 * P)
           .astype(jnp.float32) * s2[:, None])                                  # [P, 9P]
    w3t = params["w3"].reshape(Cout, P).astype(jnp.float32) * s3[:, None]       # [Cout, P]

    bias = jnp.zeros((Cout, 3), jnp.float32)
    bias = bias.at[:P, 0].set(b1).at[:P, 1].set(b2).at[:, 2].set(b3)

    coords = jnp.asarray(_lane_coords(ipb, H, W))                               # [2, Mb]

    kernel = functools.partial(_bottleneck_kernel, height=H, width=W)

    out_slab = pl.pallas_call(
        kernel,
        out_shape=jax.ShapeDtypeStruct((Cout, M), jnp.float32),
        grid=(G,),
        in_specs=[
            pl.BlockSpec((Cin, Mb), lambda i: (0, i)),
            pl.BlockSpec((P, Cin), lambda i: (0, 0)),
            pl.BlockSpec((P, 9 * P), lambda i: (0, 0)),
            pl.BlockSpec((Cout, P), lambda i: (0, 0)),
            pl.BlockSpec((Cout, 3), lambda i: (0, 0)),
            pl.BlockSpec((2, Mb), lambda i: (0, 0)),
        ],
        out_specs=pl.BlockSpec((Cout, Mb), lambda i: (0, i)),
        scratch_shapes=[pltpu.VMEM((9 * P, Mb), jnp.float32)],
        compiler_params=pltpu.CompilerParams(dimension_semantics=("parallel",)),
    )(x_slab, w1t, w2t, w3t, bias, coords)

    # [Cout, N*H*W] -> NCHW
    return jnp.transpose(out_slab.reshape(Cout, N, H, W), (1, 0, 2, 3))


# ----------------------------- reference (pure JAX) ---------------------------
def _ref_forward(x, params):
    def conv2d(x, w, stride=1, pad=0):
        return jax.lax.conv_general_dilated(
            x, w, window_strides=(stride, stride),
            padding=[(pad, pad), (pad, pad)],
            dimension_numbers=("NCHW", "OIHW", "NCHW"))

    def bn(x, g, b, m, v):
        s = g / jnp.sqrt(v + EPS)
        bias = b - m * s
        return x * s[None, :, None, None] + bias[None, :, None, None]

    residual = x
    out = jax.nn.relu(bn(conv2d(x, params["w1"]), *params["bn1"]))
    out = jax.nn.relu(bn(conv2d(out, params["w2"], stride=1, pad=1), *params["bn2"]))
    out = bn(conv2d(out, params["w3"]), *params["bn3"])
    return jax.nn.relu(out + residual)


if __name__ == "__main__":
    # Module-consistent small shapes: in_planes == planes * expansion so the
    # identity residual (downsample=None) is valid.
    N, in_planes, planes, H, W = 2, 16, 4, 16, 16
    expansion = 4
    out_planes = planes * expansion  # 16 == in_planes

    key = jax.random.PRNGKey(0)
    ks = jax.random.split(key, 8)

    def bn_params(k, c):
        k1, k2, k3, k4 = jax.random.split(k, 4)
        gamma = jax.random.uniform(k1, (c,), jnp.float32, 0.5, 1.5)
        beta = jax.random.normal(k2, (c,), jnp.float32) * 0.1
        mean = jax.random.normal(k3, (c,), jnp.float32) * 0.1
        var = jax.random.uniform(k4, (c,), jnp.float32, 0.5, 1.5)
        return (gamma, beta, mean, var)

    params = {
        "w1": jax.random.normal(ks[0], (planes, in_planes, 1, 1), jnp.float32) * 0.1,
        "w2": jax.random.normal(ks[1], (planes, planes, 3, 3), jnp.float32) * 0.1,
        "w3": jax.random.normal(ks[2], (out_planes, planes, 1, 1), jnp.float32) * 0.1,
        "bn1": bn_params(ks[3], planes),
        "bn2": bn_params(ks[4], planes),
        "bn3": bn_params(ks[5], out_planes),
    }

    x = jax.random.normal(ks[6], (N, in_planes, H, W), jnp.float32)

    out = jax.block_until_ready(resnet_bottleneck_pallas(x, params))
    ref = jax.block_until_ready(_ref_forward(x, params))
    np.testing.assert_allclose(np.asarray(out), np.asarray(ref), rtol=1e-4, atol=1e-4)

    print("KERNEL_OK")
</pallas_src>

<mosaic_0001>
module attributes {stable_mosaic.version = 11 : i64} {
  func.func @_bottleneck_kernel(%arg0: i32, %arg1: memref<16x512xf32, #tpu.memory_space<vmem>>, %arg2: memref<4x16xf32, #tpu.memory_space<vmem>>, %arg3: memref<4x36xf32, #tpu.memory_space<vmem>>, %arg4: memref<16x4xf32, #tpu.memory_space<vmem>>, %arg5: memref<16x3xf32, #tpu.memory_space<vmem>>, %arg6: memref<2x512xf32, #tpu.memory_space<vmem>>, %arg7: memref<16x512xf32, #tpu.memory_space<vmem>>, %arg8: memref<36x512xf32, #tpu.memory_space<vmem>>) attributes {dimension_semantics = [#tpu.dimension_semantics<parallel>], iteration_bounds = array<i64: 1>, scalar_prefetch = 0 : i64, scratch_operands = 1 : i64, tpu.core_type = #tpu.core_type<tc>, window_params = [{transform_indices = @transform_0, window_bounds = array<i64: 16, 512>}, {pipeline_mode = #tpu.pipeline_mode<synchronous>, transform_indices = @transform_1, window_bounds = array<i64: 4, 16>}, {pipeline_mode = #tpu.pipeline_mode<synchronous>, transform_indices = @transform_2, window_bounds = array<i64: 4, 36>}, {pipeline_mode = #tpu.pipeline_mode<synchronous>, transform_indices = @transform_3, window_bounds = array<i64: 16, 4>}, {pipeline_mode = #tpu.pipeline_mode<synchronous>, transform_indices = @transform_4, window_bounds = array<i64: 16, 3>}, {pipeline_mode = #tpu.pipeline_mode<synchronous>, transform_indices = @transform_5, window_bounds = array<i64: 2, 512>}, {transform_indices = @transform_6, window_bounds = array<i64: 16, 512>}]} {
    %c0 = arith.constant 0 : index
    %c0_0 = arith.constant 0 : index
    %0 = vector.load %arg1[%c0, %c0_0] : memref<16x512xf32, #tpu.memory_space<vmem>>, vector<16x512xf32>
    %c0_1 = arith.constant 0 : index
    %c0_2 = arith.constant 0 : index
    %1 = vector.load %arg5[%c0_1, %c0_2] : memref<16x3xf32, #tpu.memory_space<vmem>>, vector<16x3xf32>
    %c0_3 = arith.constant 0 : index
    %c0_4 = arith.constant 0 : index
    %2 = vector.load %arg2[%c0_3, %c0_4] : memref<4x16xf32, #tpu.memory_space<vmem>>, vector<4x16xf32>
    %cst = arith.constant dense<0.000000e+00> : vector<4x512xf32>
    %3 = tpu.matmul %2, %0, %cst {dimension_numbers = #tpu.dot_dimension_numbers<[1], [0], [0], [1], [0, 0, 1, 1], [], []>} : vector<4x16xf32>, vector<16x512xf32>, vector<4x512xf32> -> vector<4x512xf32>
    %4 = vector.extract_strided_slice %1 {offsets = [0, 0], sizes = [4, 1], strides = [1, 1]} : vector<16x3xf32> to vector<4x1xf32>
    %5 = vector.broadcast %4 : vector<4x1xf32> to vector<4x512xf32>
    %6 = arith.addf %3, %5 : vector<4x512xf32>
    %cst_5 = arith.constant 0.000000e+00 : f32
    %7 = vector.broadcast %cst_5 : f32 to vector<4x512xf32>
    %8 = arith.maximumf %6, %7 : vector<4x512xf32>
    %c0_6 = arith.constant 0 : index
    %c0_7 = arith.constant 0 : index
    %9 = vector.load %arg6[%c0_6, %c0_7] : memref<2x512xf32, #tpu.memory_space<vmem>>, vector<1x512xf32>
    %c1 = arith.constant 1 : index
    %c0_8 = arith.constant 0 : index
    %10 = vector.load %arg6[%c1, %c0_8] : memref<2x512xf32, #tpu.memory_space<vmem>>, vector<1x512xf32>
    %c17_i32 = arith.constant 17 : i32
    %11 = tpu.dynamic_rotate %8 by %c17_i32 dim 1 : vector<4x512xf32>, i32 -> vector<4x512xf32>
    %cst_9 = arith.constant 1.000000e+00 : f32
    %12 = vector.broadcast %cst_9 : f32 to vector<1x512xf32>
    %13 = arith.cmpf oge, %9, %12 : vector<1x512xf32>
    %cst_10 = arith.constant 1.000000e+00 : f32
    %14 = vector.broadcast %cst_10 : f32 to vector<1x512xf32>
    %15 = arith.cmpf oge, %10, %14 : vector<1x512xf32>
    %16 = arith.andi %13, %15 : vector<1x512xi1>
    %cst_11 = arith.constant 0.000000e+00 : f32
    %17 = vector.shape_cast %16 : vector<1x512xi1> to vector<1x512xi1>
    %18 = vector.broadcast %17 : vector<1x512xi1> to vector<4x512xi1>
    %19 = vector.broadcast %cst_11 : f32 to vector<4x512xf32>
    %20 = arith.select %18, %11, %19 : vector<4x512xi1>, vector<4x512xf32>
    %c0_12 = arith.constant 0 : index
    %c0_13 = arith.constant 0 : index
    %21 = vector.load %arg8[%c0_12, %c0_13] : memref<36x512xf32, #tpu.memory_space<vmem>>, vector<4x512xf32>
    tpu.vector_store %arg8[%c0_12, %c0_13], %20 {strides = array<i32>} : memref<36x512xf32, #tpu.memory_space<vmem>>, vector<4x512xf32>,
    %c16_i32 = arith.constant 16 : i32
    %22 = tpu.dynamic_rotate %8 by %c16_i32 dim 1 : vector<4x512xf32>, i32 -> vector<4x512xf32>
    %cst_14 = arith.constant 1.000000e+00 : f32
    %23 = vector.broadcast %cst_14 : f32 to vector<1x512xf32>
    %24 = arith.cmpf oge, %9, %23 : vector<1x512xf32>
    %cst_15 = arith.constant 0.000000e+00 : f32
    %25 = vector.shape_cast %24 : vector<1x512xi1> to vector<1x512xi1>
    %26 = vector.broadcast %25 : vector<1x512xi1> to vector<4x512xi1>
    %27 = vector.broadcast %cst_15 : f32 to vector<4x512xf32>
    %28 = arith.select %26, %22, %27 : vector<4x512xi1>, vector<4x512xf32>
    %c4 = arith.constant 4 : index
    %c0_16 = arith.constant 0 : index
    %29 = vector.load %arg8[%c4, %c0_16] : memref<36x512xf32, #tpu.memory_space<vmem>>, vector<4x512xf32>
    tpu.vector_store %arg8[%c4, %c0_16], %28 {strides = array<i32>} : memref<36x512xf32, #tpu.memory_space<vmem>>, vector<4x512xf32>,
    %c15_i32 = arith.constant 15 : i32
    %30 = tpu.dynamic_rotate %8 by %c15_i32 dim 1 : vector<4x512xf32>, i32 -> vector<4x512xf32>
    %cst_17 = arith.constant 1.000000e+00 : f32
    %31 = vector.broadcast %cst_17 : f32 to vector<1x512xf32>
    %32 = arith.cmpf oge, %9, %31 : vector<1x512xf32>
    %cst_18 = arith.constant 1.500000e+01 : f32
    %33 = vector.broadcast %cst_18 : f32 to vector<1x512xf32>
    %34 = arith.cmpf olt, %10, %33 : vector<1x512xf32>
    %35 = arith.andi %32, %34 : vector<1x512xi1>
    %cst_19 = arith.constant 0.000000e+00 : f32
    %36 = vector.shape_cast %35 : vector<1x512xi1> to vector<1x512xi1>
    %37 = vector.broadcast %36 : vector<1x512xi1> to vector<4x512xi1>
    %38 = vector.broadcast %cst_19 : f32 to vector<4x512xf32>
    %39 = arith.select %37, %30, %38 : vector<4x512xi1>, vector<4x512xf32>
    %c8 = arith.constant 8 : index
    %c0_20 = arith.constant 0 : index
    %40 = vector.load %arg8[%c8, %c0_20] : memref<36x512xf32, #tpu.memory_space<vmem>>, vector<4x512xf32>
    tpu.vector_store %arg8[%c8, %c0_20], %39 {strides = array<i32>} : memref<36x512xf32, #tpu.memory_space<vmem>>, vector<4x512xf32>,
    %c1_i32 = arith.constant 1 : i32
    %41 = tpu.dynamic_rotate %8 by %c1_i32 dim 1 : vector<4x512xf32>, i32 -> vector<4x512xf32>
    %cst_21 = arith.constant 1.000000e+00 : f32
    %42 = vector.broadcast %cst_21 : f32 to vector<1x512xf32>
    %43 = arith.cmpf oge, %10, %42 : vector<1x512xf32>
    %cst_22 = arith.constant 0.000000e+00 : f32
    %44 = vector.shape_cast %43 : vector<1x512xi1> to vector<1x512xi1>
    %45 = vector.broadcast %44 : vector<1x512xi1> to vector<4x512xi1>
    %46 = vector.broadcast %cst_22 : f32 to vector<4x512xf32>
    %47 = arith.select %45, %41, %46 : vector<4x512xi1>, vector<4x512xf32>
    %c12 = arith.constant 12 : index
    %c0_23 = arith.constant 0 : index
    %48 = vector.load %arg8[%c12, %c0_23] : memref<36x512xf32, #tpu.memory_space<vmem>>, vector<4x512xf32>
    tpu.vector_store %arg8[%c12, %c0_23], %47 {strides = array<i32>} : memref<36x512xf32, #tpu.memory_space<vmem>>, vector<4x512xf32>,
    %c16 = arith.constant 16 : index
    %c0_24 = arith.constant 0 : index
    %49 = vector.load %arg8[%c16, %c0_24] : memref<36x512xf32, #tpu.memory_space<vmem>>, vector<4x512xf32>
    tpu.vector_store %arg8[%c16, %c0_24], %8 {strides = array<i32>} : memref<36x512xf32, #tpu.memory_space<vmem>>, vector<4x512xf32>,
    %c511_i32 = arith.constant 511 : i32
    %50 = tpu.dynamic_rotate %8 by %c511_i32 dim 1 : vector<4x512xf32>, i32 -> vector<4x512xf32>
    %cst_25 = arith.constant 1.500000e+01 : f32
    %51 = vector.broadcast %cst_25 : f32 to vector<1x512xf32>
    %52 = arith.cmpf olt, %10, %51 : vector<1x512xf32>
    %cst_26 = arith.constant 0.000000e+00 : f32
    %53 = vector.shape_cast %52 : vector<1x512xi1> to vector<1x512xi1>
    %54 = vector.broadcast %53 : vector<1x512xi1> to vector<4x512xi1>
    %55 = vector.broadcast %cst_26 : f32 to vector<4x512xf32>
    %56 = arith.select %54, %50, %55 : vector<4x512xi1>, vector<4x512xf32>
    %c20 = arith.constant 20 : index
    %c0_27 = arith.constant 0 : index
    %57 = vector.load %arg8[%c20, %c0_27] : memref<36x512xf32, #tpu.memory_space<vmem>>, vector<4x512xf32>
    tpu.vector_store %arg8[%c20, %c0_27], %56 {strides = array<i32>} : memref<36x512xf32, #tpu.memory_space<vmem>>, vector<4x512xf32>,
    %c497_i32 = arith.constant 497 : i32
    %58 = tpu.dynamic_rotate %8 by %c497_i32 dim 1 : vector<4x512xf32>, i32 -> vector<4x512xf32>
    %cst_28 = arith.constant 1.500000e+01 : f32
    %59 = vector.broadcast %cst_28 : f32 to vector<1x512xf32>
    %60 = arith.cmpf olt, %9, %59 : vector<1x512xf32>
    %cst_29 = arith.constant 1.000000e+00 : f32
    %61 = vector.broadcast %cst_29 : f32 to vector<1x512xf32>
    %62 = arith.cmpf oge, %10, %61 : vector<1x512xf32>
    %63 = arith.andi %60, %62 : vector<1x512xi1>
    %cst_30 = arith.constant 0.000000e+00 : f32
    %64 = vector.shape_cast %63 : vector<1x512xi1> to vector<1x512xi1>
    %65 = vector.broadcast %64 : vector<1x512xi1> to vector<4x512xi1>
    %66 = vector.broadcast %cst_30 : f32 to vector<4x512xf32>
    %67 = arith.select %65, %58, %66 : vector<4x512xi1>, vector<4x512xf32>
    %c24 = arith.constant 24 : index
    %c0_31 = arith.constant 0 : index
    %68 = vector.load %arg8[%c24, %c0_31] : memref<36x512xf32, #tpu.memory_space<vmem>>, vector<4x512xf32>
    tpu.vector_store %arg8[%c24, %c0_31], %67 {strides = array<i32>} : memref<36x512xf32, #tpu.memory_space<vmem>>, vector<4x512xf32>,
    %c496_i32 = arith.constant 496 : i32
    %69 = tpu.dynamic_rotate %8 by %c496_i32 dim 1 : vector<4x512xf32>, i32 -> vector<4x512xf32>
    %cst_32 = arith.constant 1.500000e+01 : f32
    %70 = vector.broadcast %cst_32 : f32 to vector<1x512xf32>
    %71 = arith.cmpf olt, %9, %70 : vector<1x512xf32>
    %cst_33 = arith.constant 0.000000e+00 : f32
    %72 = vector.shape_cast %71 : vector<1x512xi1> to vector<1x512xi1>
    %73 = vector.broadcast %72 : vector<1x512xi1> to vector<4x512xi1>
    %74 = vector.broadcast %cst_33 : f32 to vector<4x512xf32>
    %75 = arith.select %73, %69, %74 : vector<4x512xi1>, vector<4x512xf32>
    %c28 = arith.constant 28 : index
    %c0_34 = arith.constant 0 : index
    %76 = vector.load %arg8[%c28, %c0_34] : memref<36x512xf32, #tpu.memory_space<vmem>>, vector<4x512xf32>
    tpu.vector_store %arg8[%c28, %c0_34], %75 {strides = array<i32>} : memref<36x512xf32, #tpu.memory_space<vmem>>, vector<4x512xf32>,
    %c495_i32 = arith.constant 495 : i32
    %77 = tpu.dynamic_rotate %8 by %c495_i32 dim 1 : vector<4x512xf32>, i32 -> vector<4x512xf32>
    %cst_35 = arith.constant 1.500000e+01 : f32
    %78 = vector.broadcast %cst_35 : f32 to vector<1x512xf32>
    %79 = arith.cmpf olt, %9, %78 : vector<1x512xf32>
    %cst_36 = arith.constant 1.500000e+01 : f32
    %80 = vector.broadcast %cst_36 : f32 to vector<1x512xf32>
    %81 = arith.cmpf olt, %10, %80 : vector<1x512xf32>
    %82 = arith.andi %79, %81 : vector<1x512xi1>
    %cst_37 = arith.constant 0.000000e+00 : f32
    %83 = vector.shape_cast %82 : vector<1x512xi1> to vector<1x512xi1>
    %84 = vector.broadcast %83 : vector<1x512xi1> to vector<4x512xi1>
    %85 = vector.broadcast %cst_37 : f32 to vector<4x512xf32>
    %86 = arith.select %84, %77, %85 : vector<4x512xi1>, vector<4x512xf32>
    %c32 = arith.constant 32 : index
    %c0_38 = arith.constant 0 : index
    %87 = vector.load %arg8[%c32, %c0_38] : memref<36x512xf32, #tpu.memory_space<vmem>>, vector<4x512xf32>
    tpu.vector_store %arg8[%c32, %c0_38], %86 {strides = array<i32>} : memref<36x512xf32, #tpu.memory_space<vmem>>, vector<4x512xf32>,
    %c0_39 = arith.constant 0 : index
    %c0_40 = arith.constant 0 : index
    %88 = vector.load %arg3[%c0_39, %c0_40] : memref<4x36xf32, #tpu.memory_space<vmem>>, vector<4x36xf32>
    %c0_41 = arith.constant 0 : index
    %c0_42 = arith.constant 0 : index
    %89 = vector.load %arg8[%c0_41, %c0_42] : memref<36x512xf32, #tpu.memory_space<vmem>>, vector<36x512xf32>
    %cst_43 = arith.constant dense<0.000000e+00> : vector<4x512xf32>
    %90 = tpu.matmul %88, %89, %cst_43 {dimension_numbers = #tpu.dot_dimension_numbers<[1], [0], [0], [1], [0, 0, 1, 1], [], []>} : vector<4x36xf32>, vector<36x512xf32>, vector<4x512xf32> -> vector<4x512xf32>
    %91 = vector.extract_strided_slice %1 {offsets = [0, 1], sizes = [4, 1], strides = [1, 1]} : vector<16x3xf32> to vector<4x1xf32>
    %92 = vector.broadcast %91 : vector<4x1xf32> to vector<4x512xf32>
    %93 = arith.addf %90, %92 : vector<4x512xf32>
    %cst_44 = arith.constant 0.000000e+00 : f32
    %94 = vector.broadcast %cst_44 : f32 to vector<4x512xf32>
    %95 = arith.maximumf %93, %94 : vector<4x512xf32>
    %c0_45 = arith.constant 0 : index
    %c0_46 = arith.constant 0 : index
    %96 = vector.load %arg4[%c0_45, %c0_46] : memref<16x4xf32, #tpu.memory_space<vmem>>, vector<16x4xf32>
    %cst_47 = arith.constant dense<0.000000e+00> : vector<16x512xf32>
    %97 = tpu.matmul %96, %95, %cst_47 {dimension_numbers = #tpu.dot_dimension_numbers<[1], [0], [0], [1], [0, 0, 1, 1], [], []>} : vector<16x4xf32>, vector<4x512xf32>, vector<16x512xf32> -> vector<16x512xf32>
    %98 = vector.extract_strided_slice %1 {offsets = [0, 2], sizes = [16, 1], strides = [1, 1]} : vector<16x3xf32> to vector<16x1xf32>
    %99 = vector.broadcast %98 : vector<16x1xf32> to vector<16x512xf32>
    %100 = arith.addf %97, %99 : vector<16x512xf32>
    %101 = arith.addf %100, %0 : vector<16x512xf32>
    %cst_48 = arith.constant 0.000000e+00 : f32
    %102 = vector.broadcast %cst_48 : f32 to vector<16x512xf32>
    %103 = arith.maximumf %101, %102 : vector<16x512xf32>
    %c0_49 = arith.constant 0 : index
    %c0_50 = arith.constant 0 : index
    %104 = vector.load %arg7[%c0_49, %c0_50] : memref<16x512xf32, #tpu.memory_space<vmem>>, vector<16x512xf32>
    tpu.vector_store %arg7[%c0_49, %c0_50], %103 {strides = array<i32>} : memref<16x512xf32, #tpu.memory_space<vmem>>, vector<16x512xf32>,
    return
  }
  func.func @transform_0(%arg0: i32) -> (i32, i32) {
    %c0_i32 = arith.constant 0 : i32
    %c0_i32_0 = arith.constant 0 : i32
    return %c0_i32, %arg0 : i32, i32
  }
  func.func @transform_1(%arg0: i32) -> (i32, i32) {
    %c0_i32 = arith.constant 0 : i32
    %c0_i32_0 = arith.constant 0 : i32
    %c0_i32_1 = arith.constant 0 : i32
    return %c0_i32, %c0_i32_0 : i32, i32
  }
  func.func @transform_2(%arg0: i32) -> (i32, i32) {
    %c0_i32 = arith.constant 0 : i32
    %c0_i32_0 = arith.constant 0 : i32
    %c0_i32_1 = arith.constant 0 : i32
    return %c0_i32, %c0_i32_0 : i32, i32
  }
  func.func @transform_3(%arg0: i32) -> (i32, i32) {
    %c0_i32 = arith.constant 0 : i32
    %c0_i32_0 = arith.constant 0 : i32
    %c0_i32_1 = arith.constant 0 : i32
    return %c0_i32, %c0_i32_0 : i32, i32
  }
  func.func @transform_4(%arg0: i32) -> (i32, i32) {
    %c0_i32 = arith.constant 0 : i32
    %c0_i32_0 = arith.constant 0 : i32
    %c0_i32_1 = arith.constant 0 : i32
    return %c0_i32, %c0_i32_0 : i32, i32
  }
  func.func @transform_5(%arg0: i32) -> (i32, i32) {
    %c0_i32 = arith.constant 0 : i32
    %c0_i32_0 = arith.constant 0 : i32
    %c0_i32_1 = arith.constant 0 : i32
    return %c0_i32, %c0_i32_0 : i32, i32
  }
  func.func @transform_6(%arg0: i32) -> (i32, i32) {
    %c0_i32 = arith.constant 0 : i32
    %c0_i32_0 = arith.constant 0 : i32
    return %c0_i32, %arg0 : i32, i32
  }
}

</mosaic_0001>

<bundles_post_ra>
// kernel: tpu_custom_call.1
= control target key start
LH: loop header
LB: loop body
LE: loop exit
PB: predicated region body
PF: predicated region fallthrough
CT: control target
= control target key end

     0   :  { %11 = vsyncpa [#allocation4], 0  ;;  %s1554_s0 = inlined_call_operand.hbm [shape: f32[16,512], index: 0, kind: input, shape index: {}]   ;;  %s1555_s1 = inlined_call_operand.vmem [shape: f32[4,16], index: 1, kind: input, shape index: {}]   ;;  %s1556_s2 = inlined_call_operand.vmem [shape: f32[4,36], index: 2, kind: input, shape index: {}]   ;;  %s1557_s3 = inlined_call_operand.vmem [shape: f32[16,4], index: 3, kind: input, shape index: {}]   ;;  %s1558_s4 = inlined_call_operand.vmem [shape: f32[16,3], index: 4, kind: input, shape index: {}]   ;;  %s1559_s5 = inlined_call_operand.vmem [shape: f32[2,512], index: 5, kind: input, shape index: {}]   ;;  %s1560_s6 = inlined_call_operand.hbm [shape: f32[16,512], index: 6, kind: output, shape index: {}]  }
   0x1   :  { %12 = vsyncpa [#allocation5], 0  ;;  %s1127_s21 = smov [#allocation3]   ;;  %s1079_s25 = scalar_lea.hbm %s1554_s0, 1024 }
   0x2   :  { %s18_s22 = sshll.u32 %s1127_s21, 4  ;;  %p1080_p0 = scmp.ne.s32.totalorder %s1554_s0, %s1079_s25  ;;  %s19_s22 = int_to_ptr.vmem [resolvable:$true] %s18_s22 }
   0x3   :  { %p1083_p1 = scmp.lt.u32.totalorder %s1079_s25, %s1554_s0 }
   0x5   :  { %p1085_p2 = pnand %p1083_p1, %p1080_p0 }
   0x7   :  { %1088 = shalt.err (!%p1085_p2)
}
   0x8   :  { %s1089_s30 = scalar_lea.vmem %s19_s22, 1024  ;;  %p1094_p4 = scmp.lt.s32.totalorder %s19_s22, %s19_s22 }
   0x9   :  { %p1090_p3 = scmp.ne.s32.totalorder %s19_s22, %s1089_s30  ;;  %p1095_p5 = scmp.lt.s32.totalorder %s1089_s30, %s1089_s30 }
   0xb   :  { %p1096_p6 = por %p1095_p5, %p1094_p4 }
   0xd   :  { %p1097_p7 = pnand %p1096_p6, %p1090_p3 }
   0xf   :  { %1100 = shalt.err (!%p1097_p7)
}
  0x10   :  { %s1128_s7 = smov 512   ;;  %s1129_s8 = smov 32  }
  0x11   :  { %24 = dma.hbm_to_vmem [thread:$0]  %s1554_s0, 1024, %s19_s22, [#allocation4], %s1128_s7, %s1128_s7, %s1129_s8  }
  0x12   :  { %1123 = dma.done.wait [#allocation4], 1024  }
  0x13   :  { %1124 = vsyncadd [#allocation4], 4294966272  ;;  %v1130_v0 = vmov 0.0   ;;  %v1131_v1 = vmov 0   ;;  %v1196_v2 = vld [vmem:[#allocation3 + $0x8] sm:$0xff]  ;;  %v1200_v4 = vld [vmem:[#allocation3 + $0x18] sm:$0xff]  ;;  %v215_v30 = vlaneseq }
  0x14   :  { %122 = vmatprep.mubr.f32.mxu0 %v1130_v0  ;;  %193 = vmatprep.mubr.f32.mxu1 %v1130_v0  ;;  %v1198_v3 = vld [vmem:[#allocation3 + $0x28] sm:$0xff]  ;;  %v1204_v6 = vld [vmem:[#allocation3 + $0x38] sm:$0xff]  ;;  %v1206_v7 = vld [vmem:[#allocation3] sm:$0xff]  ;;  %vm54_vm0 = vcmask 130048   ;;  %s1133_s14 = smov 1   ;;  %s1134_s15 = smov 17  }
  0x15   :  { %1075 = vset.pattern.permute.xlu0 %v1131_v1  ;;  %v1035_v5 = vpack.c.bf16 %v1198_v3, %v1196_v2  ;;  %v1208_v8 = vld [vmem:[#allocation3 + $0x20] sm:$0xff]  ;;  %v1039_v9 = vpack.c.bf16 %v1204_v6, %v1200_v4  ;;  %v1214_v11 = vld [vmem:[#allocation3 + $0x10] sm:$0xff]  ;;  %s1135_s16 = smov 15   ;;  %s1136_s17 = smov 127   ;;  %v1140_v29 = vmov 1   ;;  %v227_v32 = vshrl.u32 %v215_v30, 7 }
  0x16   :  { %v1037_v10 = vpack.c.bf16 %v1208_v8, %v1206_v7  ;;  %v1216_v12 = vld [vmem:[#allocation3 + $0x30] sm:$0xff]  ;;  %v1223_v14 = vld [vmem:[%s1558_s4] sm:$0xff]  ;;  %s1137_s18 = smov 112   ;;  %s1138_s19 = smov 113   ;;  %1076 = vset.pattern.permute.xlu1 %v1140_v29  ;;  %v1257_v37 = vand.u32 127, %v215_v30 }
  0x17   :  { %1036 = vmatprep.subr.bf16.mxu0 %v1035_v5  ;;  %v1041_v13 = vpack.c.bf16 %v1216_v12, %v1214_v11  ;;  %1040 = vmatprep.subr.bf16.mxu1 %v1039_v9  ;;  %v48_v15 = vld [vmem:[%s1555_s1] sm:$0xf]  ;;  %s1132_s1 = smov 16   ;;  %s1139_s20 = smov 111   ;;  %v1247_v34 = vsub.s32 0, %v227_v32  ;;  %v1249_v35 = vsub.s32 3, %v227_v32 }
  0x18   :  { %1038 = vmatpush1.bf16.msra.mxu0 %v1037_v10  ;;  %51 = vperm.xlu0 %1075, %v1223_v14   ;;  %v1239_v31 = vld [vmem:[%s1559_s5] ss:$2 sm:$0xf]  ;;  %v1245_v33 = vld [vmem:[%s1559_s5 + $0x1] ss:$2 sm:$0xf] }
  0x19   :  { %1042 = vmatpush1.bf16.msra.mxu1 %v1041_v13  ;;  %vm222_vm1 = vcmp.ge.f32.partialorder %v1239_v31, 1.0  ;;  %vm223_vm2 = vcmp.ge.f32.partialorder %v1245_v33, 1.0  ;;  %v1259_v38 = vsub.s32 1, %v227_v32  ;;  %v1270_v43 = vsub.s32 2, %v227_v32 }
  0x1a   :  { %v1254_v36 = vsel %vm222_vm1, 1, %v1131_v1  ;;  %v365_v41 = vsel %vm223_vm2, 1, %v1131_v1  ;;  %vm262_vm3 = vcmp.lt.s32.totalorder %v1257_v37, 16  ;;  %vm224_vm6 = vmand %vm222_vm1, %vm223_vm2  ;;  %vm360_vm7 = vcmp.lt.s32.totalorder %v1257_v37, 1 }
  0x1b   :  { %1018 = vmatmul.mubr.msk.f32.vlgmr.msra.gmra.mrb[0].mxu0 %vm54_vm0, %v48_v15  ;;  %v271_v39 = vrot.slane %v1254_v36, %v1247_v34  ;;  %v283_v40 = vrot.slane %v1254_v36, %v1249_v35  ;;  %v373_v45 = vrot.slane %v365_v41, %v1259_v38  ;;  %v377_v47 = vrot.slane %v365_v41, %v1270_v43 }
  0x1c   :  { %1019 = vmatmul.mubr.msk.f32.vlgmr.msra.gmra.mrb[0].mxu1 %vm54_vm0, %v48_v15  ;;  %711 = vmatprep.mubr.f32.mxu0 %v1130_v0  ;;  %v369_v54 = vrot.slane %v365_v41, %v1247_v34  ;;  %v381_v57 = vrot.slane %v365_v41, %v1249_v35  ;;  %v225_v58 = vsel %vm224_vm6, 1, %v1131_v1  ;;  %vm321_vm10 = vcmp.lt.f32.partialorder %v1245_v33, 15.0 }
  0x1d   :  { %782 = vmatprep.mubr.f32.mxu1 %v1130_v0  ;;  %vm284_vm4 = vcmp.eq.s32.totalorder %v271_v39, 1  ;;  %vm287_vm5 = vcmp.eq.s32.totalorder %v283_v40, 1  ;;  %vm1288_vm8 = vcmp.eq.s32.totalorder %v373_v45, 1  ;;  %vm384_vm9 = vcmp.eq.s32.totalorder %v377_v47, 1  ;;  %vm322_vm13 = vmand %vm222_vm1, %vm321_vm10 }
  0x1e   :  { %v233_v5 = vrot.slane %v225_v58, %v1259_v38  ;;  %vm382_vm11 = vcmp.eq.s32.totalorder %v369_v54, 1  ;;  %vm385_vm12 = vcmp.eq.s32.totalorder %v381_v57, 1  ;;  %vm217_vm14 = vcmp.lt.s32.totalorder %v1257_v37, 17 }
  0x1f   :  { %v423_v54 = vsel %vm321_vm10, 1, %v1131_v1 }
  0x20   :  { %vm243_vm15 = vcmp.eq.s32.totalorder %v233_v5, 1 }
  0x97   :  { %v52_v16 = vpop.permute.xlu0 %51 }
  0xee   :  { %v124_v17 = vpop.f32.mrb[0].mxu0 }
  0xef   :  { %v125_v18 = vadd.f32 %v124_v17, %v52_v16  ;;  %v195_v19 = vpop.f32.mrb[0].mxu1  ;;  %v126_v20 = vpop.f32.mrb[1].mxu0 }
  0xf0   :  { %v196_v21 = vadd.f32 %v195_v19, %v52_v16  ;;  %v127_v22 = vadd.f32 %v126_v20, %v52_v16  ;;  %v197_v23 = vpop.f32.mrb[1].mxu1 }
  0xf1   :  { %v200_v24 = vmax.f32 %v125_v18, 0.0  ;;  %v198_v25 = vadd.f32 %v197_v23, %v52_v16  ;;  %v237_v16 = vrot.slane %v225_v58, %v1270_v43 }
  0xf2   :  { %v202_v26 = vmax.f32 %v196_v21, 0.0  ;;  %v201_v27 = vmax.f32 %v127_v22, 0.0 }
  0xf3   :  { %406 = vst [vmem:[#allocation2 + $0x40] sm:$0xf] %v200_v24  ;;  %v203_v28 = vmax.f32 %v198_v25, 0.0  ;;  %254 = vrot.lane.b32.xlu0 %v200_v24, %s1132_s1  ;;  %v241_v25 = vrot.slane %v225_v58, %v1249_v35  ;;  %vm244_vm0 = vcmp.eq.s32.totalorder %v237_v16, 1 }
  0xf4   :  { %408 = vst [vmem:[#allocation2 + $0x50] sm:$0xf] %v202_v26  ;;  %407 = vst [vmem:[#allocation2 + $0x48] sm:$0xf] %v201_v27  ;;  %258 = vrot.lane.b32.xlu1 %v202_v26, %s1132_s1 }
  0xf5   :  { %409 = vst [vmem:[#allocation2 + $0x58] sm:$0xf] %v203_v28 }
  0xf7   :  { %260 = vrot.lane.b32.xlu0 %v203_v28, %s1132_s1 }
  0xf8   :  { %352 = vrot.lane.b32.xlu1 %v200_v24, %s1133_s14 }
  0xfb   :  { %354 = vrot.lane.b32.xlu0 %v201_v27, %s1133_s14 }
  0xfc   :  { %356 = vrot.lane.b32.xlu1 %v202_v26, %s1133_s14 }
  0xff   :  { %358 = vrot.lane.b32.xlu0 %v203_v28, %s1133_s14 }
 0x100   :  { %207 = vrot.lane.b32.xlu1 %v200_v24, %s1134_s15 }
 0x103   :  { %209 = vrot.lane.b32.xlu0 %v201_v27, %s1134_s15 }
 0x104   :  { %211 = vrot.lane.b32.xlu1 %v202_v26, %s1134_s15 }
 0x107   :  { %213 = vrot.lane.b32.xlu0 %v203_v28, %s1134_s15 }
 0x108   :  { %308 = vrot.lane.b32.xlu1 %v200_v24, %s1135_s16 }
 0x10b   :  { %310 = vrot.lane.b32.xlu0 %v201_v27, %s1135_s16 }
 0x10c   :  { %312 = vrot.lane.b32.xlu1 %v202_v26, %s1135_s16 }
 0x10f   :  { %314 = vrot.lane.b32.xlu0 %v203_v28, %s1135_s16 }
 0x110   :  { %410 = vrot.lane.b32.xlu1 %v200_v24, %s1136_s17 }
 0x113   :  { %412 = vrot.lane.b32.xlu0 %v201_v27, %s1136_s17 }
 0x114   :  { %414 = vrot.lane.b32.xlu1 %v202_v26, %s1136_s17 }
 0x117   :  { %416 = vrot.lane.b32.xlu0 %v203_v28, %s1136_s17 }
 0x118   :  { %508 = vrot.lane.b32.xlu1 %v200_v24, %s1137_s18 }
 0x11b   :  { %510 = vrot.lane.b32.xlu0 %v201_v27, %s1137_s18 }
 0x11c   :  { %512 = vrot.lane.b32.xlu1 %v202_v26, %s1137_s18 }
 0x11f   :  { %514 = vrot.lane.b32.xlu0 %v203_v28, %s1137_s18 }
 0x120   :  { %464 = vrot.lane.b32.xlu1 %v200_v24, %s1138_s19 }
 0x123   :  { %466 = vrot.lane.b32.xlu0 %v201_v27, %s1138_s19 }
 0x124   :  { %256 = vrot.lane.b32.xlu1 %v201_v27, %s1132_s1 }
 0x127   :  { %470 = vrot.lane.b32.xlu0 %v203_v28, %s1138_s19 }
 0x128   :  { %468 = vrot.lane.b32.xlu1 %v202_v26, %s1138_s19 }
 0x12b   :  { %564 = vrot.lane.b32.xlu0 %v201_v27, %s1139_s20  ;;  %v323_v27 = vsel %vm322_vm13, 1, %v1131_v1 }
 0x12c   :  { %562 = vrot.lane.b32.xlu1 %v200_v24, %s1139_s20  ;;  %v229_v24 = vrot.slane %v225_v58, %v1247_v34  ;;  %v331_v40 = vrot.slane %v323_v27, %v1259_v38  ;;  %v335_v45 = vrot.slane %v323_v27, %v1270_v43 }
 0x12e   :  { %vm242_vm1 = vcmp.eq.s32.totalorder %v229_v24, 1  ;;  %vm341_vm6 = vcmp.eq.s32.totalorder %v331_v40, 1 }
 0x12f   :  { %568 = vrot.lane.b32.xlu0 %v203_v28, %s1139_s20 }
 0x130   :  { %566 = vrot.lane.b32.xlu1 %v202_v26, %s1139_s20 }
 0x134   :  { %627 = vperm.xlu1 %1076, %v1223_v14  }
 0x165   :  { %v1268_v42 = vpop.permute.xlu0 %254 }
 0x166   :  { %v1272_v44 = vpop.permute.xlu1 %258 }
 0x169   :  { %v261_v46 = vpop.permute.xlu0 %260 }
 0x16a   :  { %v353_v48 = vpop.permute.xlu1 %352  ;;  %v263_v49 = vsel %vm262_vm3, %v1272_v44, %v261_v46  ;;  %v266_v50 = vsel %vm262_vm3, %v261_v46, %v1268_v42 }
 0x16b   :  { %v288_v51 = vsel %vm284_vm4, %v266_v50, 0.0  ;;  %v291_v52 = vsel %vm287_vm5, %v263_v49, 0.0  ;;  %vm245_vm4 = vcmp.eq.s32.totalorder %v241_v25, 1  ;;  %vm316_vm5 = vcmp.lt.s32.totalorder %v1257_v37, 15 }
 0x16c   :  { %v296_v55 = vrot.slane %v288_v51, 4  ;;  %v299_v56 = vrot.slane %v291_v52, 4  ;;  %v327_v51 = vrot.slane %v323_v27, %v1247_v34  ;;  %v339_v52 = vrot.slane %v323_v27, %v1249_v35 }
 0x16d   :  { %v355_v59 = vpop.permute.xlu0 %354 }
 0x16e   :  { %304 = vst [vmem:[#allocation2] sm:$0xf0] %v296_v55  ;;  %307 = vst [vmem:[#allocation2 + $0x18] sm:$0xf0] %v299_v56  ;;  %v357_v60 = vpop.permute.xlu1 %356  ;;  %v363_v61 = vsel %vm360_vm7, %v353_v48, %v355_v59 }
 0x16f   :  { %v362_v62 = vsel %vm360_vm7, %v355_v59, %v357_v60  ;;  %v387_v63 = vsel %vm1288_vm8, %v363_v61, 0.0  ;;  %vm1336_vm8 = vcmp.eq.s32.totalorder %v327_v51, 1  ;;  %v427_v61 = vrot.slane %v423_v54, %v1247_v34 }
 0x170   :  { %v388_v9 = vsel %vm384_vm9, %v362_v62, 0.0  ;;  %v395_v10 = vrot.slane %v387_v63, 4  ;;  %vm343_vm9 = vcmp.eq.s32.totalorder %v339_v52, 1  ;;  %v431_v63 = vrot.slane %v423_v54, %v1259_v38 }
 0x171   :  { %v396_v13 = vrot.slane %v388_v9, 4  ;;  %v359_v15 = vpop.permute.xlu0 %358  ;;  %vm440_vm13 = vcmp.eq.s32.totalorder %v427_v61, 1 }
 0x172   :  { %403 = vst [vmem:[#allocation2 + $0x28] sm:$0xf0] %v395_v10  ;;  %v208_v17 = vpop.permute.xlu1 %207  ;;  %v361_v18 = vsel %vm360_vm7, %v357_v60, %v359_v15  ;;  %v364_v19 = vsel %vm360_vm7, %v359_v15, %v353_v48  ;;  %vm342_vm7 = vcmp.eq.s32.totalorder %v335_v45, 1 }
 0x173   :  { %404 = vst [vmem:[#allocation2 + $0x30] sm:$0xf0] %v396_v13  ;;  %v386_v20 = vsel %vm382_vm11, %v364_v19, 0.0  ;;  %v389_v21 = vsel %vm385_vm12, %v361_v18, 0.0  ;;  %vm477_vm11 = vcmp.lt.f32.partialorder %v1239_v31, 15.0  ;;  %vm418_vm12 = vcmp.lt.s32.totalorder %v1257_v37, 127 }
 0x174   :  { %v394_v22 = vrot.slane %v386_v20, 4  ;;  %v397_v23 = vrot.slane %v389_v21, 4  ;;  %v521_v16 = vsel %vm477_vm11, 1, %v1131_v1  ;;  %v439_v18 = vrot.slane %v423_v54, %v1249_v35 }
 0x175   :  { %v210_v26 = vpop.permute.xlu0 %209  ;;  %v533_v51 = vrot.slane %v521_v16, %v1270_v43  ;;  %v537_v52 = vrot.slane %v521_v16, %v1249_v35 }
 0x176   :  { %402 = vst [vmem:[#allocation2 + $0x20] sm:$0xf0] %v394_v22  ;;  %405 = vst [vmem:[#allocation2 + $0x38] sm:$0xf0] %v397_v23  ;;  %v212_v28 = vpop.permute.xlu1 %211  ;;  %v220_v29 = vsel %vm217_vm14, %v208_v17, %v210_v26  ;;  %v525_v22 = vrot.slane %v521_v16, %v1247_v34 }
 0x177   :  { %v219_v30 = vsel %vm217_vm14, %v210_v26, %v212_v28  ;;  %v247_v32 = vsel %vm243_vm15, %v220_v29, 0.0 }
 0x178   :  { %v248_v39 = vsel %vm244_vm0, %v219_v30, 0.0  ;;  %251 = vst [vmem:[#allocation2 + $0x8] sm:$0xf] %v247_v32  ;;  %vm1364_vm0 = vcmp.eq.s32.totalorder %v439_v18, 1  ;;  %v529_v32 = vrot.slane %v521_v16, %v1259_v38  ;;  %v275_v16 = vrot.slane %v1254_v36, %v1259_v38 }
 0x179   :  { %252 = vst [vmem:[#allocation2 + $0x10] sm:$0xf] %v248_v39  ;;  %v214_v41 = vpop.permute.xlu0 %213 }
 0x17a   :  { %v309_v46 = vpop.permute.xlu1 %308  ;;  %v218_v47 = vsel %vm217_vm14, %v212_v28, %v214_v41  ;;  %v221_v48 = vsel %vm217_vm14, %v214_v41, %v208_v17  ;;  %v435_v17 = vrot.slane %v423_v54, %v1270_v43  ;;  %vm441_vm14 = vcmp.eq.s32.totalorder %v431_v63, 1 }
 0x17b   :  { %v246_v49 = vsel %vm242_vm1, %v221_v48, 0.0  ;;  %v249_v50 = vsel %vm245_vm4, %v218_v47, 0.0  ;;  %vm1373_vm1 = vmand %vm477_vm11, %vm223_vm2  ;;  %vm516_vm4 = vcmp.lt.s32.totalorder %v1257_v37, 112  ;;  %vm539_vm2 = vcmp.eq.s32.totalorder %v529_v32, 1 }
 0x17c   :  { %250 = vst [vmem:[#allocation2] sm:$0xf] %v246_v49  ;;  %253 = vst [vmem:[#allocation2 + $0x18] sm:$0xf] %v249_v50  ;;  %vm1360_vm15 = vcmp.eq.s32.totalorder %v435_v17, 1  ;;  %v279_v17 = vrot.slane %v1254_v36, %v1270_v43 }
 0x17d   :  { %v311_v53 = vpop.permute.xlu0 %310 }
 0x17e   :  { %v313_v55 = vpop.permute.xlu1 %312  ;;  %v319_v56 = vsel %vm316_vm5, %v309_v46, %v311_v53 }
 0x17f   :  { %v318_v57 = vsel %vm316_vm5, %v311_v53, %v313_v55  ;;  %v345_v58 = vsel %vm341_vm6, %v319_v56, 0.0  ;;  %v479_v56 = vsel %vm1373_vm1, 1, %v1131_v1  ;;  %vm1402_vm6 = vcmp.eq.s32.totalorder %v533_v51, 1 }
 0x180   :  { %v346_v60 = vsel %vm342_vm7, %v318_v57, 0.0  ;;  %349 = vst [vmem:[#allocation2 + $0x28] sm:$0xf] %v345_v58  ;;  %vm1406_vm7 = vcmp.eq.s32.totalorder %v537_v52, 1  ;;  %v491_v33 = vrot.slane %v479_v56, %v1270_v43 }
 0x181   :  { %350 = vst [vmem:[#allocation2 + $0x30] sm:$0xf] %v346_v60  ;;  %v315_v62 = vpop.permute.xlu0 %314 }
 0x182   :  { %v411_v5 = vpop.permute.xlu1 %410  ;;  %v317_v9 = vsel %vm316_vm5, %v313_v55, %v315_v62  ;;  %v320_v10 = vsel %vm316_vm5, %v315_v62, %v309_v46  ;;  %vm1382_vm5 = vcmp.eq.s32.totalorder %v525_v22, 1  ;;  %v483_v62 = vrot.slane %v479_v56, %v1247_v34 }
 0x183   :  { %v344_v13 = vsel %vm1336_vm8, %v320_v10, 0.0  ;;  %v347_v15 = vsel %vm343_vm9, %v317_v9, 0.0  ;;  %v609_v49 = vld [vmem:[#allocation2 + $0x18] sm:$0xff]  ;;  %vm472_vm8 = vcmp.lt.s32.totalorder %v1257_v37, 113 }
 0x184   :  { %348 = vst [vmem:[#allocation2 + $0x20] sm:$0xf] %v344_v13  ;;  %351 = vst [vmem:[#allocation2 + $0x38] sm:$0xf] %v347_v15  ;;  %vm1423_vm9 = vcmp.eq.s32.totalorder %v483_v62, 1 }
 0x185   :  { %v413_v19 = vpop.permute.xlu0 %412 }
 0x186   :  { %v415_v20 = vpop.permute.xlu1 %414  ;;  %v421_v21 = vsel %vm418_vm12, %v411_v5, %v413_v19 }
 0x187   :  { %v420_v23 = vsel %vm418_vm12, %v413_v19, %v415_v20  ;;  %v444_v24 = vsel %vm440_vm13, %v421_v21, 0.0  ;;  %vm1433_vm13 = vcmp.eq.s32.totalorder %v275_v16, 1  ;;  %v611_v16 = vld [vmem:[#allocation2 + $0x28] sm:$0xff] }
 0x188   :  { %v445_v25 = vsel %vm441_vm14, %v420_v23, 0.0  ;;  %v452_v26 = vrot.slane %v444_v24, 4  ;;  %vm1437_vm14 = vcmp.eq.s32.totalorder %v279_v17, 1  ;;  %v612_v23 = vld [vmem:[#allocation2 + $0x30] sm:$0xff] }
 0x189   :  { %v453_v29 = vrot.slane %v445_v25, 4  ;;  %v417_v30 = vpop.permute.xlu0 %416  ;;  %v487_v25 = vrot.slane %v479_v56, %v1259_v38 }
 0x18a   :  { %460 = vst [vmem:[#allocation2 + $0x40] sm:$0xf0] %v452_v26  ;;  %v509_v40 = vpop.permute.xlu1 %508  ;;  %v419_v41 = vsel %vm418_vm12, %v415_v20, %v417_v30  ;;  %v422_v45 = vsel %vm418_vm12, %v417_v30, %v411_v5  ;;  %vm575_vm12 = vmand %vm477_vm11, %vm321_vm10  ;;  %v495_v26 = vrot.slane %v479_v56, %v1249_v35 }
 0x18b   :  { %461 = vst [vmem:[#allocation2 + $0x48] sm:$0xf0] %v453_v29  ;;  %v446_v47 = vsel %vm1360_vm15, %v419_v41, 0.0  ;;  %v447_v48 = vsel %vm1364_vm0, %v422_v45, 0.0  ;;  %v613_v50 = vld [vmem:[#allocation2 + $0x38] sm:$0xff]  ;;  %v576_v32 = vsel %vm575_vm12, 1, %v1131_v1 }
 0x18c   :  { %v454_v53 = vrot.slane %v446_v47, 4  ;;  %v455_v54 = vrot.slane %v447_v48, 4  ;;  %v1051_v55 = vpack.c.bf16 %v613_v50, %v609_v49  ;;  %vm1457_vm10 = vcmp.eq.s32.totalorder %v487_v25, 1  ;;  %v610_v62 = vld [vmem:[#allocation2 + $0x20] sm:$0xff]  ;;  %v47_v48 = vld [vmem:[%s1558_s4 + $0x8] sm:$0xff] }
 0x18d   :  { %v511_v57 = vpop.permute.xlu0 %510  ;;  %vm499_vm11 = vcmp.eq.s32.totalorder %v495_v26, 1  ;;  %vm1461_vm15 = vcmp.eq.s32.totalorder %v491_v33, 1  ;;  %v580_v49 = vrot.slane %v576_v32, %v1247_v34  ;;  %v592_v34 = vrot.slane %v576_v32, %v1249_v35 }
 0x18e   :  { %462 = vst [vmem:[#allocation2 + $0x50] sm:$0xf0] %v454_v53  ;;  %463 = vst [vmem:[#allocation2 + $0x58] sm:$0xf0] %v455_v54  ;;  %v513_v58 = vpop.permute.xlu1 %512  ;;  %v519_v59 = vsel %vm516_vm4, %v509_v40, %v511_v57  ;;  %1052 = vmatprep.subr.bf16.mxu1 %v1051_v55 }
 0x18f   :  { %v518_v60 = vsel %vm516_vm4, %v511_v57, %v513_v58  ;;  %v542_v61 = vsel %vm1382_vm5, %v519_v59, 0.0  ;;  %vm593_vm0 = vcmp.eq.s32.totalorder %v580_v49, 1  ;;  %v588_v59 = vrot.slane %v576_v32, %v1270_v43  ;;  %v606_v43 = vld [vmem:[#allocation2] sm:$0xff] }
 0x190   :  { %v543_v63 = vsel %vm539_vm2, %v518_v60, 0.0  ;;  %v550_v5 = vrot.slane %v542_v61, 4  ;;  %vm1482_vm1 = vcmp.eq.s32.totalorder %v592_v34, 1  ;;  %vm634_vm2 = vcmask 1043456  }
 0x191   :  { %v551_v13 = vrot.slane %v543_v63, 4  ;;  %v515_v15 = vpop.permute.xlu0 %514  ;;  %vm1490_vm5 = vcmp.eq.s32.totalorder %v588_v59, 1 }
 0x192   :  { %558 = vst [vmem:[#allocation2 + $0x60] sm:$0xf0] %v550_v5  ;;  %v465_v18 = vpop.permute.xlu1 %464  ;;  %v517_v19 = vsel %vm516_vm4, %v513_v58, %v515_v15  ;;  %v520_v20 = vsel %vm516_vm4, %v515_v15, %v509_v40  ;;  %v584_v58 = vrot.slane %v576_v32, %v1259_v38  ;;  %v615_v28 = vld [vmem:[#allocation2 + $0x48] sm:$0xff] }
 0x193   :  { %559 = vst [vmem:[#allocation2 + $0x68] sm:$0xf0] %v551_v13  ;;  %v544_v21 = vsel %vm1402_vm6, %v517_v19, 0.0  ;;  %v545_v22 = vsel %vm1406_vm7, %v520_v20, 0.0  ;;  %vm630_vm6 = vcmask 293888   ;;  %vm804_vm7 = vcmask 31744  }
 0x194   :  { %v552_v36 = vrot.slane %v544_v21, 4  ;;  %v553_v24 = vrot.slane %v545_v22, 4  ;;  %vm1486_vm4 = vcmp.eq.s32.totalorder %v584_v58, 1 }
 0x195   :  { %v467_v29 = vpop.permute.xlu0 %466  ;;  %v616_v32 = vld [vmem:[#allocation2 + $0x50] sm:$0xff] }
 0x196   :  { %560 = vst [vmem:[#allocation2 + $0x70] sm:$0xf0] %v552_v36  ;;  %561 = vst [vmem:[#allocation2 + $0x78] sm:$0xf0] %v553_v24  ;;  %v257_v31 = vpop.permute.xlu1 %256  ;;  %v475_v30 = vsel %vm472_vm8, %v465_v18, %v467_v29  ;;  %v617_v36 = vld [vmem:[#allocation2 + $0x58] sm:$0xff] }
 0x197   :  { %v264_v39 = vsel %vm262_vm3, %v257_v31, %v1272_v44  ;;  %v265_v40 = vsel %vm262_vm3, %v1268_v42, %v257_v31  ;;  %v500_v41 = vsel %vm1423_vm9, %v475_v30, 0.0  ;;  %vm570_vm3 = vcmp.lt.s32.totalorder %v1257_v37, 111 }
 0x198   :  { %v289_v45 = vsel %vm1433_vm13, %v265_v40, 0.0  ;;  %v290_v46 = vsel %vm1437_vm14, %v264_v39, 0.0  ;;  %504 = vst [vmem:[#allocation2 + $0x60] sm:$0xf] %v500_v41  ;;  %v614_v39 = vld [vmem:[#allocation2 + $0x40] sm:$0xff] }
 0x199   :  { %v297_v44 = vrot.slane %v289_v45, 4  ;;  %v298_v47 = vrot.slane %v290_v46, 4  ;;  %v471_v42 = vpop.permute.xlu0 %470  ;;  %v605_v46 = vld [vmem:[%s1556_s2] sm:$0xf] }
 0x19a   :  { %v469_v50 = vpop.permute.xlu1 %468  ;;  %v476_v51 = vsel %vm472_vm8, %v471_v42, %v465_v18  ;;  %v1045_v18 = vpack.c.bf16 %v610_v62, %v606_v43 }
 0x19b   :  { %305 = vst [vmem:[#allocation2 + $0x8] sm:$0xf0] %v297_v44  ;;  %306 = vst [vmem:[#allocation2 + $0x10] sm:$0xf0] %v298_v47  ;;  %v474_v52 = vsel %vm472_vm8, %v467_v29, %v469_v50  ;;  %v473_v53 = vsel %vm472_vm8, %v469_v50, %v471_v42  ;;  %v503_v54 = vsel %vm499_vm11, %v476_v51, 0.0  ;;  %v1141_v42 = vmov 2  }
 0x19c   :  { %v501_v55 = vsel %vm1457_vm10, %v474_v52, 0.0  ;;  %v502_v56 = vsel %vm1461_vm15, %v473_v53, 0.0  ;;  %507 = vst [vmem:[#allocation2 + $0x78] sm:$0xf] %v503_v54  ;;  %1077 = vset.pattern.permute.xlu0 %v1141_v42  ;;  %1078 = vset.pattern.permute.xlu1 %v1141_v42 }
 0x19d   :  { %505 = vst [vmem:[#allocation2 + $0x68] sm:$0xf] %v501_v55  ;;  %506 = vst [vmem:[#allocation2 + $0x70] sm:$0xf] %v502_v56  ;;  %v565_v57 = vpop.permute.xlu0 %564  ;;  %796 = vperm.xlu0 %1077, %v1223_v14   ;;  %801 = vperm.xlu1 %1078, %v47_v48   ;;  %v794_v14 = vld [vmem:[%s1557_s3 + $0x8] sm:$0xff] }
 0x19e   :  { %v563_v60 = vpop.permute.xlu1 %562 }
 0x19f   :  { %v573_v61 = vsel %vm570_vm3, %v563_v60, %v565_v57  ;;  %v618_v30 = vld [vmem:[#allocation2 + $0x60] sm:$0xff] }
 0x1a0   :  { %v597_v63 = vsel %vm593_vm0, %v573_v61, 0.0  ;;  %v1049_v41 = vpack.c.bf16 %v618_v30, %v614_v39  ;;  %v793_v61 = vld [vmem:[%s1557_s3] sm:$0xff]  ;;  %s1142_s3 = smov [#allocation6]  }
 0x1a1   :  { %601 = vst [vmem:[#allocation2 + $0x80] sm:$0xf] %v597_v63  ;;  %v569_v38 = vpop.permute.xlu0 %568  ;;  %s1006_s30 = sshll.u32 %s1142_s3, 4  ;;  %s1007_s30 = int_to_ptr.vmem [resolvable:$true] %s1006_s30 }
 0x1a2   :  { %v567_v10 = vpop.permute.xlu1 %566  ;;  %v574_v13 = vsel %vm570_vm3, %v569_v38, %v563_v60  ;;  %v607_v15 = vld [vmem:[#allocation2 + $0x8] sm:$0xff]  ;;  %v608_v17 = vld [vmem:[#allocation2 + $0x10] sm:$0xff]  ;;  %s1101_s9 = scalar_lea.vmem %s1007_s30, 1024  ;;  %p1106_p9 = scmp.lt.s32.totalorder %s1007_s30, %s1007_s30 }
 0x1a3   :  { %v572_v19 = vsel %vm570_vm3, %v565_v57, %v567_v10  ;;  %v571_v20 = vsel %vm570_vm3, %v567_v10, %v569_v38  ;;  %v600_v21 = vsel %vm1482_vm1, %v574_v13, 0.0  ;;  %v1043_v22 = vpack.c.bf16 %v611_v16, %v607_v15  ;;  %v621_v24 = vld [vmem:[#allocation2 + $0x78] sm:$0xff]  ;;  %p1102_p8 = scmp.ne.s32.totalorder %s1007_s30, %s1101_s9  ;;  %p1107_p10 = scmp.lt.s32.totalorder %s1101_s9, %s1101_s9 }
 0x1a4   :  { %v598_v25 = vsel %vm1486_vm4, %v572_v19, 0.0  ;;  %v599_v26 = vsel %vm1490_vm5, %v571_v20, 0.0  ;;  %604 = vst [vmem:[#allocation2 + $0x98] sm:$0xf] %v600_v21  ;;  %v1053_v27 = vpack.c.bf16 %v612_v23, %v608_v17  ;;  %v619_v29 = vld [vmem:[#allocation2 + $0x68] sm:$0xff]  ;;  %v1055_v33 = vpack.c.bf16 %v621_v24, %v617_v36  ;;  %v620_v31 = vld [vmem:[#allocation2 + $0x70] sm:$0xff] }
 0x1a5   :  { %602 = vst [vmem:[#allocation2 + $0x88] sm:$0xf] %v598_v25  ;;  %603 = vst [vmem:[#allocation2 + $0x90] sm:$0xf] %v599_v26  ;;  %1044 = vmatprep.subr.bf16.mxu0 %v1043_v22  ;;  %v1047_v37 = vpack.c.bf16 %v619_v29, %v615_v28  ;;  %v1057_v40 = vpack.c.bf16 %v620_v31, %v616_v32  ;;  %p1108_p11 = por %p1107_p10, %p1106_p9 }
 0x1a6   :  { %1054 = vmatpush1.bf16.msra.mxu1 %v1053_v27  ;;  %1046 = vmatpush1.bf16.msra.mxu0 %v1045_v18 }
 0x1a7   :  { %1048 = vmatprep.subr.bf16.mxu0 %v1047_v37  ;;  %1056 = vmatprep.subr.bf16.mxu1 %v1055_v33  ;;  %p1109_p12 = pnand %p1108_p11, %p1102_p8 }
 0x1a8   :  { %v622_v47 = vld [vmem:[#allocation2 + $0x80] sm:$0xf] }
 0x1aa   :  { %1058 = vmatpush1.bf16.msra.mxu1 %v1057_v40  ;;  %1050 = vmatpush1.bf16.msra.mxu0 %v1049_v41 }
 0x1ab   :  { %v625_v45 = vld [vmem:[#allocation2 + $0x98] sm:$0xf] }
 0x1ac   :  { %v623_v1 = vld [vmem:[#allocation2 + $0x88] sm:$0xf]  ;;  %1024 = vmatprep.subr.msk.mxu1 %vm634_vm2, %v625_v45  ;;  %v624_v44 = vld [vmem:[#allocation2 + $0x90] sm:$0xf] }
 0x1ad   :  { %1021 = vmatprep.subr.msk.mxu0 %vm634_vm2, %v623_v1 }
 0x1ae   :  { %1022 = vmatpush1.msk.msra.mxu0 %vm634_vm2, %v622_v47  ;;  %1025 = vmatpush1.msk.msra.mxu1 %vm634_vm2, %v624_v44 }
 0x1af   :  { %1023 = vmatmul.mubr.msk.f32.vlgmr.msra.gmra.mrb[2].mxu0 %vm630_vm6, %v605_v46  ;;  %1026 = vmatmul.mubr.msk.f32.vlgmr.msra.gmra.mrb[2].mxu1 %vm630_vm6, %v605_v46 }
 0x1b0   :  { %887 = vmatprep.mubr.f32.mxu0 %v1130_v0  ;;  %964 = vmatprep.mubr.f32.mxu1 %v1130_v0 }
 0x1b3   :  { %v628_v49 = vpop.permute.xlu1 %627 }
 0x21c   :  { %v797_v62 = vpop.permute.xlu0 %796  ;;  %v802_v15 = vpop.permute.xlu1 %801 }
 0x282   :  { %v713_v50 = vpop.f32.mrb[2].mxu0  ;;  %v784_v51 = vpop.f32.mrb[2].mxu1 }
 0x283   :  { %v714_v52 = vadd.f32 %v713_v50, %v628_v49  ;;  %v785_v53 = vadd.f32 %v784_v51, %v628_v49  ;;  %v715_v54 = vpop.f32.mrb[3].mxu0  ;;  %v786_v55 = vpop.f32.mrb[3].mxu1 }
 0x284   :  { %v716_v56 = vadd.f32 %v715_v54, %v628_v49  ;;  %v787_v34 = vadd.f32 %v786_v55, %v628_v49 }
 0x285   :  { %v789_v59 = vmax.f32 %v714_v52, 0.0  ;;  %v791_v60 = vmax.f32 %v785_v53, 0.0 }
 0x286   :  { %v790_v57 = vmax.f32 %v716_v56, 0.0  ;;  %v792_v58 = vmax.f32 %v787_v34, 0.0 }
 0x288   :  { %1027 = vmatprep.subr.msk.mxu0 %vm634_vm2, %v790_v57  ;;  %1031 = vmatprep.subr.msk.mxu1 %vm634_vm2, %v792_v58 }
 0x289   :  { %1028 = vmatpush1.msk.msra.mxu0 %vm634_vm2, %v789_v59  ;;  %1032 = vmatpush1.msk.msra.mxu1 %vm634_vm2, %v791_v60 }
 0x28a   :  { %1029 = vmatmul.mubr.msk.f32.vlgmr.msra.gmra.mrb[4].mxu0 %vm804_vm7, %v793_v61  ;;  %1033 = vmatmul.mubr.msk.f32.vlgmr.msra.gmra.mrb[4].mxu1 %vm804_vm7, %v793_v61 }
 0x28b   :  { %893 = vmatprep.mubr.f32.mxu0 %v1130_v0  ;;  %970 = vmatprep.mubr.f32.mxu1 %v1130_v0 }
 0x28e   :  { %1030 = vmatmul.mubr.msk.f32.gmra.mrb[6].mxu0 %vm804_vm7, %v794_v14  ;;  %1034 = vmatmul.mubr.msk.f32.gmra.mrb[6].mxu1 %vm804_vm7, %v794_v14 }
 0x35d   :  { %v889_v63 = vpop.f32.mrb[4].mxu0  ;;  %v966_v5 = vpop.f32.mrb[4].mxu1 }
 0x35e   :  { %v968_v35 = vpop.f32.mrb[5].mxu1  ;;  %v890_v9 = vadd.f32 %v889_v63, %v797_v62  ;;  %v967_v38 = vadd.f32 %v966_v5, %v797_v62  ;;  %v891_v43 = vpop.f32.mrb[5].mxu0 }
 0x35f   :  { %v969_v10 = vadd.f32 %v968_v35, %v797_v62  ;;  %v892_v13 = vadd.f32 %v891_v43, %v797_v62 }
 0x360   :  { %v977_v16 = vadd.f32 %v890_v9, %v1206_v7  ;;  %v979_v0 = vadd.f32 %v967_v38, %v1214_v11 }
 0x361   :  { %v980_v17 = vadd.f32 %v969_v10, %v1200_v4  ;;  %v978_v18 = vadd.f32 %v892_v13, %v1196_v2  ;;  %v895_v19 = vpop.f32.mrb[6].mxu0  ;;  %v972_v20 = vpop.f32.mrb[6].mxu1 }
 0x362   :  { %v985_v21 = vmax.f32 %v977_v16, 0.0  ;;  %v987_v22 = vmax.f32 %v979_v0, 0.0  ;;  %v896_v23 = vadd.f32 %v895_v19, %v802_v15  ;;  %v973_v36 = vadd.f32 %v972_v20, %v802_v15  ;;  %v897_v24 = vpop.f32.mrb[7].mxu0  ;;  %v974_v25 = vpop.f32.mrb[7].mxu1 }
 0x363   :  { %v988_v26 = vmax.f32 %v980_v17, 0.0  ;;  %v986_v27 = vmax.f32 %v978_v18, 0.0  ;;  %v898_v28 = vadd.f32 %v897_v24, %v802_v15  ;;  %v975_v29 = vadd.f32 %v974_v25, %v802_v15 }
 0x364   :  { %993 = vst [vmem:[#allocation6] sm:$0xff] %v985_v21  ;;  %995 = vst [vmem:[#allocation6 + $0x10] sm:$0xff] %v987_v22  ;;  %v981_v7 = vadd.f32 %v896_v23, %v1208_v8  ;;  %v983_v4 = vadd.f32 %v973_v36, %v1216_v12 }
 0x365   :  { %996 = vst [vmem:[#allocation6 + $0x18] sm:$0xff] %v988_v26  ;;  %994 = vst [vmem:[#allocation6 + $0x8] sm:$0xff] %v986_v27  ;;  %v982_v2 = vadd.f32 %v898_v28, %v1198_v3  ;;  %v984_v11 = vadd.f32 %v975_v29, %v1204_v6 }
 0x366   :  { %v989_v33 = vmax.f32 %v981_v7, 0.0  ;;  %v991_v37 = vmax.f32 %v983_v4, 0.0 }
 0x367   :  { %v990_v31 = vmax.f32 %v982_v2, 0.0  ;;  %v992_v30 = vmax.f32 %v984_v11, 0.0 }
 0x368   :  { %997 = vst [vmem:[#allocation6 + $0x20] sm:$0xff] %v989_v33  ;;  %999 = vst [vmem:[#allocation6 + $0x30] sm:$0xff] %v991_v37 }
 0x369   :  { %998 = vst [vmem:[#allocation6 + $0x28] sm:$0xff] %v990_v31  ;;  %1000 = vst [vmem:[#allocation6 + $0x38] sm:$0xff] %v992_v30 }
 0x36a   :  { %1112 = shalt.err (!%p1109_p12)
}
 0x36b   :  { %s1113_s11 = scalar_lea.hbm %s1560_s6, 1024 }
 0x36c   :  { %p1114_p13 = scmp.ne.s32.totalorder %s1560_s6, %s1113_s11  ;;  %p1117_p0 = scmp.lt.u32.totalorder %s1113_s11, %s1560_s6 }
 0x36e   :  { %p1119_p1 = pnand %p1117_p0, %p1114_p13 }
 0x370   :  { %1122 = shalt.err (!%p1119_p1)
}
 0x371   :  { %1012 = dma.vmem_to_hbm [thread:$0]  %s1007_s30, 1024, %s1560_s6, [#allocation5], %s1128_s7, %s1128_s7, %s1129_s8  }
 0x372   :  { %1125 = dma.done.wait [#allocation5], 1024  }
 0x373   :  { %1126 = vsyncadd [#allocation5], 4294966272 }
 0x374   :  { %1016 = vsyncpa [#allocation4], 1 }
 0x375   :  { %1017 = vsyncpa [#allocation5], 1 }

</bundles_post_ra>
